<compile_context>
chip_gen: v5e
topology: v5e:2x2
jax: 0.10.0
libtpu: 0.0.40
codegen_flags: <defaults>
</compile_context>

<pallas_src>
import functools

import jax
import jax.numpy as jnp
from jax.experimental import pallas as pl
from jax.experimental.pallas import tpu as pltpu

_LANE = 128
_SUB = 8
_CHUNK_ROWS = 128          # inner fori_loop step in the moments kernel (16 vregs/operand)
_MIN_BLOCK_ROWS = 1024     # 512 KiB f32 — below this the ~0.35us/step overhead dominates
_MAX_BLOCK_ROWS = 8192     # 4 MiB f32 per input block (2 inputs x 2 buffers = 16 MiB VMEM)


@functools.lru_cache(maxsize=None)
def _vmem_limit_bytes():
    """Per-generation VMEM limit (v5e/v6e: 128 MiB physical, v7x: 64 MiB)."""
    cap = 64 * 1024 * 1024
    try:
        info = pltpu.get_tpu_info()
        cap = int(getattr(info, "vmem_capacity_bytes", cap)) or cap
    except Exception:
        pass
    # leave ~25% headroom for Mosaic-internal scratch, cap at 96 MiB.
    return int(min(max(cap * 3 // 4, 32 * 1024 * 1024), 96 * 1024 * 1024))


def _compiler_params(dimension_semantics):
    # Constructed directly (no getattr/TypeError fallback) so the megacore
    # annotation and the VMEM limit are always applied.
    return pltpu.CompilerParams(dimension_semantics=dimension_semantics,
                                vmem_limit_bytes=_vmem_limit_bytes())


# ----------------------------------------------------------------------------
# Paired statistics kernel (shared by NCC and MSE): one streaming HBM pass.
#   n_stats == 5 : (Sx, Sy, Sxy, Sxx, Syy)   -> NCC raw moments
#   n_stats == 1 : (sum((x - y)^2),)         -> MSE
# ----------------------------------------------------------------------------
def _paired_stats_kernel(x_ref, y_ref, o_ref, *accs, n_stats):
    r = pl.program_id(2)

    @pl.when(r == 0)
    def _init():
        for a in accs:
            a[...] = jnp.zeros_like(a)

    t_rows = x_ref.shape[1]
    n_chunks = t_rows // _CHUNK_ROWS

    def _chunk_stats(x, y):
        if n_stats == 1:                       # MSE path: 3 ops / vreg-pair
            d = x - y
            return (d * d,)
        return (x, y, x * y, x * x, y * y)     # NCC raw-moment path

    def _body(i, carry):
        off = pl.multiple_of(i * _CHUNK_ROWS, _CHUNK_ROWS)
        x = x_ref[0, pl.ds(off, _CHUNK_ROWS), :].astype(jnp.float32)
        y = y_ref[0, pl.ds(off, _CHUNK_ROWS), :].astype(jnp.float32)
        # (chunk_rows, 128) -> (chunk_rows//8, 8, 128): layout-free view; the
        # leading-axis sums are pure VPU adds into vreg-shaped carries.
        x = x.reshape(_CHUNK_ROWS // _SUB, _SUB, _LANE)
        y = y.reshape(_CHUNK_ROWS // _SUB, _SUB, _LANE)
        return tuple(c + jnp.sum(s, axis=0) for c, s in zip(carry, _chunk_stats(x, y)))

    init = tuple(jnp.zeros((_SUB, _LANE), jnp.float32) for _ in range(n_stats))
    partial = jax.lax.fori_loop(0, n_chunks, _body, init)
    for a, p in zip(accs, partial):
        a[...] += p

    @pl.when(r == pl.num_programs(2) - 1)
    def _finalize():
        rows = [jnp.full((1, _LANE), jnp.sum(a[...]), jnp.float32) for a in accs]
        rows.append(jnp.zeros((_SUB - n_stats, _LANE), jnp.float32))
        o_ref[0, 0] = jnp.concatenate(rows, axis=0)


def _choose_block_rows(rows, cap):
    """rows and cap are multiples of _CHUNK_ROWS.  Pick a block size (in rows)
    that divides `rows`, is <= cap and >= _MIN_BLOCK_ROWS; return None if no
    such divisor exists (caller pads up to a fixed `cap`-row block)."""
    if rows <= cap:
        return rows
    m = rows // _CHUNK_ROWS
    for k in range(cap // _CHUNK_ROWS, 0, -1):
        if m % k == 0:
            t = k * _CHUNK_ROWS
            return t if t >= _MIN_BLOCK_ROWS else None
    return None


def _paired_reduce(x, y, *, n_stats, max_block_rows=None):
    """One HBM pass over x, y (both (B', ...)).  Returns ((B', n_stats) sums,
    true per-row element count).  Zero padding is statistics-neutral."""
    assert x.shape == y.shape
    b = x.shape[0]
    n = int(x.size) // b
    xf = x.reshape(b, n)
    yf = y.reshape(b, n)

    cap = int(max_block_rows or _MAX_BLOCK_ROWS)
    cap = max(_CHUNK_ROWS, (cap // _CHUNK_ROWS) * _CHUNK_ROWS)

    rows = -(-n // _LANE)                               # lanes of 128
    rows = -(-rows // _CHUNK_ROWS) * _CHUNK_ROWS        # multiple of the inner chunk
    t_rows = _choose_block_rows(rows, cap)
    if t_rows is None:                                  # prime-ish size: fixed block + pad
        t_rows = cap
        rows = -(-rows // t_rows) * t_rows
    pad = rows * _LANE - n
    if pad:
        xf = jnp.pad(xf, ((0, 0), (0, pad)))
        yf = jnp.pad(yf, ((0, 0), (0, pad)))
    xf = xf.reshape(b, rows, _LANE)
    yf = yf.reshape(b, rows, _LANE)

    chunks = rows // t_rows
    # Keep the second TensorCore busy on v7x when there is only one batch row.
    n_split = 2 if (b == 1 and chunks >= 2 and chunks % 2 == 0) else 1
    cps = chunks // n_split
    grid = (b, n_split, cps)

    in_spec = pl.BlockSpec((1, t_rows, _LANE), lambda i, s, r: (i, s * cps + r, 0))
    out = pl.pallas_call(
        functools.partial(_paired_stats_kernel, n_stats=n_stats),
        out_shape=jax.ShapeDtypeStruct((b, n_split, _SUB, _LANE), jnp.float32),
        grid=grid,
        in_specs=[in_spec, in_spec],
        out_specs=pl.BlockSpec((1, 1, _SUB, _LANE), lambda i, s, r: (i, s, 0, 0)),
        scratch_shapes=[pltpu.VMEM((_SUB, _LANE), jnp.float32)] * n_stats,
        compiler_params=_compiler_params(("parallel", "parallel", "arbitrary")),
    )(xf, yf)
    return jnp.sum(out[:, :, :n_stats, 0], axis=1), n


def NCC_loss_pallas(x, y, eps=1e-8):
    b, c = x.shape[0], x.shape[1]
    m, n = _paired_reduce(x.reshape(b * c, -1), y.reshape(b * c, -1), n_stats=5)
    nf = jnp.float32(n)
    sx, sy, sxy, sxx, syy = (m[:, k] for k in range(5))
    num = sxy - sx * sy / nf
    varx = sxx - sx * sx / nf
    vary = syy - sy * sy / nf
    # TODO(synk): the raw-moment form can lose precision for strongly non-zero-mean
    # intensities at ~1e7 voxels; pre-normalize images or shift by a cheap mean
    # estimate if that matters for production data (sanity-checked here only on
    # zero-mean inputs).
    ncc = num / jnp.sqrt(varx * vary + eps)              # same eps placement as reference
    return -jnp.mean(ncc)


def MSE_loss_pallas(x, y):
    b, c = x.shape[0], x.shape[1]
    s, _ = _paired_reduce(x.reshape(b, -1), y.reshape(b, -1), n_stats=1)
    denom = x.size // c                                  # B * D * H * W
    return jnp.sum(s) / jnp.float32(denom)


# ----------------------------------------------------------------------------
# Fused regularizer kernel: one pass over (B, 3, D, H, W) produces both
#   sum(displace^2)              (for l2)
#   sum(relu(-det(Jacobian)))    (for jac)
# ----------------------------------------------------------------------------
def _shift_next(x, axis):
    """out[..., i, ...] = x[..., (i+1) % size, ...] along `axis`; the wrapped last
    entry is garbage that the caller masks out.  Vreg-aligned dims use an XLU
    rotate (pltpu.roll, off the VALU/store critical path); unaligned dims fall
    back to a slice + wrap copy."""
    size = x.shape[axis]
    minor = axis == x.ndim - 1 or axis == -1
    tile = _LANE if minor else _SUB
    if size % tile == 0:
        return pltpu.roll(x, size - 1, axis)
    hi = [slice(None)] * x.ndim
    lo = [slice(None)] * x.ndim
    hi[axis] = slice(1, None)
    lo[axis] = slice(0, 1)
    return jnp.concatenate([x[tuple(hi)], x[tuple(lo)]], axis=axis)


def _reg_kernel(d_ref, o_ref, carry, acc_jac, acc_l2, *, D, H, W, tD):
    j = pl.program_id(1)

    @pl.when(j == 0)
    def _init():
        acc_jac[...] = jnp.zeros_like(acc_jac)
        acc_l2[...] = jnp.zeros_like(acc_l2)

    sw = (W - 1) * 0.5      # scale for the w/x displacement component
    sh = (H - 1) * 0.5      # h/y component
    sd = (D - 1) * 0.5      # d/z component

    # Interior mask (hoisted out of the slice loop): determinants are only valid
    # for rows < H-1 and cols < W-1; D-direction validity is handled by the loop
    # structure (only consecutive real slices are paired).
    row = jax.lax.broadcasted_iota(jnp.int32, (H, W), 0)
    col = jax.lax.broadcasted_iota(jnp.int32, (H, W), 1)
    interior = jnp.where((row < H - 1) & (col < W - 1), 1.0, 0.0).astype(jnp.float32)

    def _load(z):
        u0 = d_ref[0, 0, z].astype(jnp.float32)
        u1 = d_ref[0, 1, z].astype(jnp.float32)
        u2 = d_ref[0, 2, z].astype(jnp.float32)
        return u0, u1, u2

    def _relu_negdet(p0, p1, p2, c0, c1, c2):
        # Forward differences of the voxel-scaled displacement; the identity grid
        # contributes only +1 on the Jacobian diagonal (folded into a00/a11/a22).
        # TODO(synk): on v7x this block could run in bf16 (f32 accumulation) to
        # halve VALU work, pending a precision check.
        dz0 = c0 - p0
        dz1 = c1 - p1
        dz2 = c2 - p2
        dy0 = _shift_next(p0, 0) - p0
        dy1 = _shift_next(p1, 0) - p1
        dy2 = _shift_next(p2, 0) - p2
        dx0 = _shift_next(p0, 1) - p0
        dx1 = _shift_next(p1, 1) - p1
        dx2 = _shift_next(p2, 1) - p2
        a00 = dx0 + 1.0
        a11 = dy1 + 1.0
        a22 = dz2 + 1.0
        det = (a00 * (a11 * a22 - dz1 * dy2)
               - dy0 * (dx1 * a22 - dz1 * dx2)
               + dz0 * (dx1 * dy2 - a11 * dx2))
        return jnp.maximum(-det, 0.0) * interior

    valid = jnp.minimum(tD, D - j * tD)   # real slices in this (possibly tail) slab

    # slice 0 of the slab
    u0, u1, u2 = _load(0)
    acc_l2[...] += u0 * u0 + u1 * u1 + u2 * u2
    f0 = u0 * sw
    f1 = u1 * sh
    f2 = u2 * sd

    @pl.when(j > 0)
    def _cross_slab():        # base slice is the carried last slice of the previous slab
        acc_jac[...] += _relu_negdet(carry[0], carry[1], carry[2], f0, f1, f2)

    # slices 1..valid-1, carrying the previous scaled slice as loop values
    def _body(z, prev):
        p0, p1, p2 = prev
        v0, v1, v2 = _load(z)
        acc_l2[...] += v0 * v0 + v1 * v1 + v2 * v2
        g0 = v0 * sw
        g1 = v1 * sh
        g2 = v2 * sd
        acc_jac[...] += _relu_negdet(p0, p1, p2, g0, g1, g2)
        return (g0, g1, g2)

    last0, last1, last2 = jax.lax.fori_loop(1, valid, _body, (f0, f1, f2))

    # carry the last real slice's scaled displacement to the next slab
    carry[0] = last0
    carry[1] = last1
    carry[2] = last2

    @pl.when(j == pl.num_programs(1) - 1)
    def _finalize():
        o_ref[0] = jnp.concatenate(
            [jnp.full((1, _LANE), jnp.sum(acc_jac[...]), jnp.float32),
             jnp.full((1, _LANE), jnp.sum(acc_l2[...]), jnp.float32),
             jnp.zeros((_SUB - 2, _LANE), jnp.float32)], axis=0)


def fused_reg_losses_pallas(displace_field, *, slab_depth=None):
    """Single HBM pass over the displacement field; returns (l2_loss, jac_loss)."""
    b, c, d, h, w = displace_field.shape
    assert c == 3 and h >= 2 and w >= 2
    itemsize = jnp.dtype(displace_field.dtype).itemsize
    bytes_per_slice = 3 * h * w * itemsize
    if slab_depth is None:
        # ~8 MiB D-slabs (no divisibility requirement: cdiv grid, in-kernel bound).
        budget = min(8 * 1024 * 1024, _vmem_limit_bytes() // 6)
        td = max(1, min(d, budget // bytes_per_slice))
    else:
        td = max(1, min(d, int(slab_depth)))
    n_slabs = -(-d // td)
    grid = (b, n_slabs)

    out = pl.pallas_call(
        functools.partial(_reg_kernel, D=d, H=h, W=w, tD=td),
        out_shape=jax.ShapeDtypeStruct((b, _SUB, _LANE), jnp.float32),
        grid=grid,
        in_specs=[pl.BlockSpec((1, 3, td, h, w), lambda i, j: (i, 0, j, 0, 0))],
        out_specs=pl.BlockSpec((1, _SUB, _LANE), lambda i, j: (i, 0, 0)),
        scratch_shapes=[pltpu.VMEM((3, h, w), jnp.float32),   # carried scaled slice
                        pltpu.VMEM((h, w), jnp.float32),      # jac partial sums
                        pltpu.VMEM((h, w), jnp.float32)],     # l2 partial sums
        compiler_params=_compiler_params(("parallel", "arbitrary")),
    )(displace_field)

    jac_sum = jnp.sum(out[:, 0, 0])
    l2_sum = jnp.sum(out[:, 1, 0])
    l2_loss = l2_sum / jnp.float32(displace_field.size)
    if d > 1:
        jac_loss = jac_sum / jnp.float32(b * (d - 1) * (h - 1) * (w - 1))
    else:
        jac_loss = jnp.float32(0.0)
    return l2_loss, jac_loss


def l2_loss_pallas(displace_field):
    return fused_reg_losses_pallas(displace_field)[0]


def jac_det_loss_pallas(displace_field):
    return fused_reg_losses_pallas(displace_field)[1]


# ----------------------------------------------------------------------------
# TrainLoss port
# ----------------------------------------------------------------------------
class TrainLossPallas:
    """Pallas/JAX port of TrainLoss.forward (no learnable parameters)."""

    def __init__(self, sim='NCC', reg=None, alpha=None, alp_sca=1.0, sca_fn='exp'):
        self.alpha = alpha
        if sim == 'MSE':
            self.sim_loss = MSE_loss_pallas
        elif sim == 'NCC':
            self.sim_loss = NCC_loss_pallas
        elif sim == 'LNCC':
            # TODO(synk): local_NCC_loss (9^3 box-filter conv3d) not ported to Pallas.
            raise NotImplementedError("LNCC similarity not implemented in this port")
        if reg is None:
            self.reg_names, self.reg_alpha = [], []
        else:
            names = reg.split('_')
            alphas = [float(a) for a in alpha.split('_')]
            assert len(names) == len(alphas)
            for r in names:
                if r == 'tv':
                    # TODO(synk): tv_loss depends on undefined normalize_deformation(); not ported.
                    raise NotImplementedError("tv regularizer not implemented in this port")
                assert r in ('l2', 'jac')
            self.reg_names, self.reg_alpha = names, alphas
        self.alp_sca = alp_sca
        self.sca_fn = sca_fn

    def __call__(self, deformed_img, template_img, displace_field, idx=0, return_all=False):
        sim_loss = self.sim_loss(deformed_img, template_img)
        reg_loss = jnp.float32(0.0)
        buff = [sim_loss]
        if self.reg_names:
            # One fused pass over the displacement field provides both l2 and jac.
            l2_val, jac_val = fused_reg_losses_pallas(displace_field)
            terms = {'l2': l2_val, 'jac': jac_val}
            for name, a in zip(self.reg_names, self.reg_alpha):
                if self.sca_fn == 'exp':
                    a = self.alp_sca ** idx * a
                elif self.sca_fn == 'linear':
                    a = a * (self.alp_sca - 1) / 2 * idx + a
                this_loss = terms[name]
                reg_loss = reg_loss + a * this_loss
                buff.append(this_loss)
        tot_loss = sim_loss + reg_loss
        if return_all:
            return buff
        # Return device scalars (no .item()/float()) to avoid a host sync per step;
        # values match the PyTorch (tot, sim.item(), reg.item()).
        return tot_loss, sim_loss, reg_loss


# ----------------------------------------------------------------------------
# Pure-JAX references (sanity checking only)
# ----------------------------------------------------------------------------
def _ncc_ref(x, y, eps=1e-8):
    xm = jnp.mean(x, axis=(2, 3, 4), keepdims=True)
    ym = jnp.mean(y, axis=(2, 3, 4), keepdims=True)
    xc, yc = x - xm, y - ym
    num = jnp.sum(xc * yc, axis=(2, 3, 4))
    den = jnp.sqrt(jnp.sum(xc ** 2, axis=(2, 3, 4)) * jnp.sum(yc ** 2, axis=(2, 3, 4)) + eps)
    return -jnp.mean(num / den)


def _l2_ref(d):
    return jnp.mean(d ** 2)


def _jac_ref(disp):
    b, _, dd, hh, ww = disp.shape
    disp = disp.at[:, 0].multiply((ww - 1) / 2).at[:, 1].multiply((hh - 1) / 2).at[:, 2].multiply((dd - 1) / 2)
    dg, hg, wg = jnp.meshgrid(jnp.arange(dd), jnp.arange(hh), jnp.arange(ww), indexing='ij')
    grid = jnp.stack((wg, hg, dg), axis=0).astype(jnp.float32)[None].repeat(b, axis=0)
    f = grid + disp
    dz = f[:, :, 1:, :-1, :-1] - f[:, :, :-1, :-1, :-1]
    dy = f[:, :, :-1, 1:, :-1] - f[:, :, :-1, :-1, :-1]
    dx = f[:, :, :-1, :-1, 1:] - f[:, :, :-1, :-1, :-1]
    J = jnp.transpose(jnp.stack((dx, dy, dz), axis=-1), (0, 2, 3, 4, 1, 5))
    det = (J[..., 0, 0] * (J[..., 1, 1] * J[..., 2, 2] - J[..., 1, 2] * J[..., 2, 1])
           - J[..., 0, 1] * (J[..., 1, 0] * J[..., 2, 2] - J[..., 1, 2] * J[..., 2, 0])
           + J[..., 0, 2] * (J[..., 1, 0] * J[..., 2, 1] - J[..., 1, 1] * J[..., 2, 0]))
    return jnp.mean(jax.nn.relu(-det))


def _assert_close(name, got, want, tol):
    got = float(got)
    want = float(want)
    assert abs(got - want) <= tol * (1.0 + abs(want)), (name, got, want)


if __name__ == "__main__":
    key = jax.random.PRNGKey(0)
    k1, k2, k3, k4, k5, k6 = jax.random.split(key, 6)

    # --- Main end-to-end check (lane-aligned W exercises the pltpu.roll path) ---
    B, D, H, W = 2, 1, 8, 16
    Wl = 128
    deformed = jax.random.normal(k1, (B, 1, 8, 16, Wl), jnp.float32)
    template = jax.random.normal(k2, (B, 1, 8, 16, Wl), jnp.float32)
    displace = 0.02 * jax.random.normal(k3, (B, 3, 8, 16, Wl), jnp.float32)

    loss_mod = TrainLossPallas(sim='NCC', reg='l2_jac', alpha='1.0_0.5',
                               alp_sca=0.9, sca_fn='exp')
    idx = 1
    tot, sim, reg = loss_mod(deformed, template, displace, idx=idx)
    tot = jax.block_until_ready(tot)
    tot_ref = (_ncc_ref(deformed, template)
               + (0.9 ** idx) * 1.0 * _l2_ref(displace)
               + (0.9 ** idx) * 0.5 * _jac_ref(displace))
    _assert_close("total", tot, tot_ref, 2e-3)

    # --- MSE similarity path (specialized sum((x-y)^2) kernel) ---
    mse = jax.block_until_ready(MSE_loss_pallas(deformed, template))
    mse_ref = jnp.mean(jnp.sum((deformed - template) ** 2, axis=1))
    _assert_close("mse", mse, mse_ref, 1e-3)

    # --- Awkward (unaligned) spatial size: moments padding + shift fallback +
    #     ragged D tail with cross-slab carry in the reg kernel ---
    d2 = jax.random.normal(k4, (1, 1, 7, 20, 24), jnp.float32)
    t2 = jax.random.normal(k5, (1, 1, 7, 20, 24), jnp.float32)
    ncc2 = jax.block_until_ready(NCC_loss_pallas(d2, t2))
    _assert_close("ncc_unaligned", ncc2, _ncc_ref(d2, t2), 1e-3)
    disp2 = 0.1 * jax.random.normal(k6, (1, 3, 7, 20, 24), jnp.float32)
    l2_2, jac_2 = fused_reg_losses_pallas(disp2, slab_depth=3)   # slabs of 3,3,1 slices
    jax.block_until_ready(jac_2)
    _assert_close("l2_unaligned", l2_2, _l2_ref(disp2), 1e-4)
    _assert_close("jac_unaligned", jac_2, _jac_ref(disp2), 1e-3)

    # --- Multi-chunk + core-split accumulation path of the moments kernel
    #     (small max_block_rows override so a small array exercises it) ---
    xa = jax.random.normal(jax.random.PRNGKey(7), (1, 8 * 128 * 128), jnp.float32)
    ya = jax.random.normal(jax.random.PRNGKey(8), (1, 8 * 128 * 128), jnp.float32)
    m, _ = _paired_reduce(xa, ya, n_stats=5, max_block_rows=256)
    m = jax.block_until_ready(m)
    ref = jnp.stack([xa.sum(1), ya.sum(1), (xa * ya).sum(1),
                     (xa * xa).sum(1), (ya * ya).sum(1)], axis=1)
    assert jnp.allclose(m, ref, rtol=1e-3, atol=1.0), (m, ref)

    print("KERNEL_OK")
</pallas_src>

<mosaic_0001>
module attributes {stable_mosaic.version = 11 : i64} {
  func.func @_paired_stats_kernel(%arg0: i32, %arg1: i32, %arg2: i32, %arg3: memref<1x128x128xf32, #tpu.memory_space<vmem>>, %arg4: memref<1x128x128xf32, #tpu.memory_space<vmem>>, %arg5: memref<1x1x8x128xf32, #tpu.memory_space<vmem>>, %arg6: memref<8x128xf32, #tpu.memory_space<vmem>>, %arg7: memref<8x128xf32, #tpu.memory_space<vmem>>, %arg8: memref<8x128xf32, #tpu.memory_space<vmem>>, %arg9: memref<8x128xf32, #tpu.memory_space<vmem>>, %arg10: memref<8x128xf32, #tpu.memory_space<vmem>>) attributes {dimension_semantics = [#tpu.dimension_semantics<parallel>, #tpu.dimension_semantics<parallel>, #tpu.dimension_semantics<arbitrary>], iteration_bounds = array<i64: 2, 1, 1>, scalar_prefetch = 0 : i64, scratch_operands = 5 : i64, tpu.core_type = #tpu.core_type<tc>, window_params = [{transform_indices = @transform_0, window_bounds = array<i64: 1, 128, 128>}, {transform_indices = @transform_1, window_bounds = array<i64: 1, 128, 128>}, {transform_indices = @transform_2, window_bounds = array<i64: 1, 1, 8, 128>}]} {
    %c0_i32 = arith.constant 0 : i32
    %0 = arith.cmpi eq, %arg2, %c0_i32 : i32
    %1 = arith.extui %0 : i1 to i32
    %c0_i32_0 = arith.constant 0 : i32
    %2 = arith.cmpi ne, %1, %c0_i32_0 : i32
    scf.if %2 {
      %cst_36 = arith.constant 0.000000e+00 : f32
      %49 = vector.broadcast %cst_36 : f32 to vector<8x128xf32>
      %c0_37 = arith.constant 0 : index
      %c0_38 = arith.constant 0 : index
      %50 = vector.load %arg6[%c0_37, %c0_38] : memref<8x128xf32, #tpu.memory_space<vmem>>, vector<8x128xf32>
      tpu.vector_store %arg6[%c0_37, %c0_38], %49 {strides = array<i32>} : memref<8x128xf32, #tpu.memory_space<vmem>>, vector<8x128xf32>,
      %cst_39 = arith.constant 0.000000e+00 : f32
      %51 = vector.broadcast %cst_39 : f32 to vector<8x128xf32>
      %c0_40 = arith.constant 0 : index
      %c0_41 = arith.constant 0 : index
      %52 = vector.load %arg7[%c0_40, %c0_41] : memref<8x128xf32, #tpu.memory_space<vmem>>, vector<8x128xf32>
      tpu.vector_store %arg7[%c0_40, %c0_41], %51 {strides = array<i32>} : memref<8x128xf32, #tpu.memory_space<vmem>>, vector<8x128xf32>,
      %cst_42 = arith.constant 0.000000e+00 : f32
      %53 = vector.broadcast %cst_42 : f32 to vector<8x128xf32>
      %c0_43 = arith.constant 0 : index
      %c0_44 = arith.constant 0 : index
      %54 = vector.load %arg8[%c0_43, %c0_44] : memref<8x128xf32, #tpu.memory_space<vmem>>, vector<8x128xf32>
      tpu.vector_store %arg8[%c0_43, %c0_44], %53 {strides = array<i32>} : memref<8x128xf32, #tpu.memory_space<vmem>>, vector<8x128xf32>,
      %cst_45 = arith.constant 0.000000e+00 : f32
      %55 = vector.broadcast %cst_45 : f32 to vector<8x128xf32>
      %c0_46 = arith.constant 0 : index
      %c0_47 = arith.constant 0 : index
      %56 = vector.load %arg9[%c0_46, %c0_47] : memref<8x128xf32, #tpu.memory_space<vmem>>, vector<8x128xf32>
      tpu.vector_store %arg9[%c0_46, %c0_47], %55 {strides = array<i32>} : memref<8x128xf32, #tpu.memory_space<vmem>>, vector<8x128xf32>,
      %cst_48 = arith.constant 0.000000e+00 : f32
      %57 = vector.broadcast %cst_48 : f32 to vector<8x128xf32>
      %c0_49 = arith.constant 0 : index
      %c0_50 = arith.constant 0 : index
      %58 = vector.load %arg10[%c0_49, %c0_50] : memref<8x128xf32, #tpu.memory_space<vmem>>, vector<8x128xf32>
      tpu.vector_store %arg10[%c0_49, %c0_50], %57 {strides = array<i32>} : memref<8x128xf32, #tpu.memory_space<vmem>>, vector<8x128xf32>,
    } else {
    }
    %cst = arith.constant 0.000000e+00 : f32
    %3 = vector.broadcast %cst : f32 to vector<8x128xf32>
    %cst_1 = arith.constant 0.000000e+00 : f32
    %4 = vector.broadcast %cst_1 : f32 to vector<8x128xf32>
    %cst_2 = arith.constant 0.000000e+00 : f32
    %5 = vector.broadcast %cst_2 : f32 to vector<8x128xf32>
    %cst_3 = arith.constant 0.000000e+00 : f32
    %6 = vector.broadcast %cst_3 : f32 to vector<8x128xf32>
    %cst_4 = arith.constant 0.000000e+00 : f32
    %7 = vector.broadcast %cst_4 : f32 to vector<8x128xf32>
    %c0_i32_5 = arith.constant 0 : i32
    %c128_i32 = arith.constant 128 : i32
    %8 = arith.muli %c0_i32_5, %c128_i32 : i32
    %9 = tpu.assume_multiple %8, 128 : i32
    %c0 = arith.constant 0 : index
    %10 = arith.index_cast %9 : i32 to index
    %c0_6 = arith.constant 0 : index
    %11 = vector.load %arg3[%c0, %10, %c0_6] : memref<1x128x128xf32, #tpu.memory_space<vmem>>, vector<1x128x128xf32>
    %12 = vector.shape_cast %11 : vector<1x128x128xf32> to vector<128x128xf32>
    %c0_7 = arith.constant 0 : index
    %13 = arith.index_cast %9 : i32 to index
    %c0_8 = arith.constant 0 : index
    %14 = vector.load %arg4[%c0_7, %13, %c0_8] : memref<1x128x128xf32, #tpu.memory_space<vmem>>, vector<1x128x128xf32>
    %15 = vector.shape_cast %14 : vector<1x128x128xf32> to vector<128x128xf32>
    %16 = vector.shape_cast %12 : vector<128x128xf32> to vector<16x8x128xf32>
    %17 = vector.shape_cast %15 : vector<128x128xf32> to vector<16x8x128xf32>
    %18 = arith.mulf %16, %17 : vector<16x8x128xf32>
    %19 = arith.mulf %16, %16 : vector<16x8x128xf32>
    %20 = arith.mulf %17, %17 : vector<16x8x128xf32>
    %cst_9 = arith.constant dense<0.000000e+00> : vector<8x128xf32>
    %21 = vector.multi_reduction <add>, %16, %cst_9 [0] : vector<16x8x128xf32> to vector<8x128xf32>
    %22 = arith.addf %3, %21 : vector<8x128xf32>
    %cst_10 = arith.constant dense<0.000000e+00> : vector<8x128xf32>
    %23 = vector.multi_reduction <add>, %17, %cst_10 [0] : vector<16x8x128xf32> to vector<8x128xf32>
    %24 = arith.addf %4, %23 : vector<8x128xf32>
    %cst_11 = arith.constant dense<0.000000e+00> : vector<8x128xf32>
    %25 = vector.multi_reduction <add>, %18, %cst_11 [0] : vector<16x8x128xf32> to vector<8x128xf32>
    %26 = arith.addf %5, %25 : vector<8x128xf32>
    %cst_12 = arith.constant dense<0.000000e+00> : vector<8x128xf32>
    %27 = vector.multi_reduction <add>, %19, %cst_12 [0] : vector<16x8x128xf32> to vector<8x128xf32>
    %28 = arith.addf %6, %27 : vector<8x128xf32>
    %cst_13 = arith.constant dense<0.000000e+00> : vector<8x128xf32>
    %29 = vector.multi_reduction <add>, %20, %cst_13 [0] : vector<16x8x128xf32> to vector<8x128xf32>
    %30 = arith.addf %7, %29 : vector<8x128xf32>
    %c1_i32 = arith.constant 1 : i32
    %c0_14 = arith.constant 0 : index
    %c0_15 = arith.constant 0 : index
    %31 = vector.load %arg6[%c0_14, %c0_15] : memref<8x128xf32, #tpu.memory_space<vmem>>, vector<8x128xf32>
    %32 = arith.addf %31, %22 : vector<8x128xf32>
    %c0_16 = arith.constant 0 : index
    %c0_17 = arith.constant 0 : index
    %33 = vector.load %arg6[%c0_16, %c0_17] : memref<8x128xf32, #tpu.memory_space<vmem>>, vector<8x128xf32>
    tpu.vector_store %arg6[%c0_16, %c0_17], %32 {strides = array<i32>} : memref<8x128xf32, #tpu.memory_space<vmem>>, vector<8x128xf32>,
    %c0_18 = arith.constant 0 : index
    %c0_19 = arith.constant 0 : index
    %34 = vector.load %arg7[%c0_18, %c0_19] : memref<8x128xf32, #tpu.memory_space<vmem>>, vector<8x128xf32>
    %35 = arith.addf %34, %24 : vector<8x128xf32>
    %c0_20 = arith.constant 0 : index
    %c0_21 = arith.constant 0 : index
    %36 = vector.load %arg7[%c0_20, %c0_21] : memref<8x128xf32, #tpu.memory_space<vmem>>, vector<8x128xf32>
    tpu.vector_store %arg7[%c0_20, %c0_21], %35 {strides = array<i32>} : memref<8x128xf32, #tpu.memory_space<vmem>>, vector<8x128xf32>,
    %c0_22 = arith.constant 0 : index
    %c0_23 = arith.constant 0 : index
    %37 = vector.load %arg8[%c0_22, %c0_23] : memref<8x128xf32, #tpu.memory_space<vmem>>, vector<8x128xf32>
    %38 = arith.addf %37, %26 : vector<8x128xf32>
    %c0_24 = arith.constant 0 : index
    %c0_25 = arith.constant 0 : index
    %39 = vector.load %arg8[%c0_24, %c0_25] : memref<8x128xf32, #tpu.memory_space<vmem>>, vector<8x128xf32>
    tpu.vector_store %arg8[%c0_24, %c0_25], %38 {strides = array<i32>} : memref<8x128xf32, #tpu.memory_space<vmem>>, vector<8x128xf32>,
    %c0_26 = arith.constant 0 : index
    %c0_27 = arith.constant 0 : index
    %40 = vector.load %arg9[%c0_26, %c0_27] : memref<8x128xf32, #tpu.memory_space<vmem>>, vector<8x128xf32>
    %41 = arith.addf %40, %28 : vector<8x128xf32>
    %c0_28 = arith.constant 0 : index
    %c0_29 = arith.constant 0 : index
    %42 = vector.load %arg9[%c0_28, %c0_29] : memref<8x128xf32, #tpu.memory_space<vmem>>, vector<8x128xf32>
    tpu.vector_store %arg9[%c0_28, %c0_29], %41 {strides = array<i32>} : memref<8x128xf32, #tpu.memory_space<vmem>>, vector<8x128xf32>,
    %c0_30 = arith.constant 0 : index
    %c0_31 = arith.constant 0 : index
    %43 = vector.load %arg10[%c0_30, %c0_31] : memref<8x128xf32, #tpu.memory_space<vmem>>, vector<8x128xf32>
    %44 = arith.addf %43, %30 : vector<8x128xf32>
    %c0_32 = arith.constant 0 : index
    %c0_33 = arith.constant 0 : index
    %45 = vector.load %arg10[%c0_32, %c0_33] : memref<8x128xf32, #tpu.memory_space<vmem>>, vector<8x128xf32>
    tpu.vector_store %arg10[%c0_32, %c0_33], %44 {strides = array<i32>} : memref<8x128xf32, #tpu.memory_space<vmem>>, vector<8x128xf32>,
    %c0_i32_34 = arith.constant 0 : i32
    %46 = arith.cmpi eq, %arg2, %c0_i32_34 : i32
    %47 = arith.extui %46 : i1 to i32
    %c0_i32_35 = arith.constant 0 : i32
    %48 = arith.cmpi ne, %47, %c0_i32_35 : i32
    scf.if %48 {
      %c0_36 = arith.constant 0 : index
      %c0_37 = arith.constant 0 : index
      %49 = vector.load %arg6[%c0_36, %c0_37] : memref<8x128xf32, #tpu.memory_space<vmem>>, vector<8x128xf32>
      %50 = vector.shape_cast %49 : vector<8x128xf32> to vector<1x8x128xf32>
      %cst_38 = arith.constant dense<0.000000e+00> : vector<1xf32>
      %51 = vector.multi_reduction <add>, %50, %cst_38 [1, 2] : vector<1x8x128xf32> to vector<1xf32>
      %52 = vector.shape_cast %51 : vector<1xf32> to vector<1x1x1xf32>
      %53 = vector.extract %52[0, 0, 0] : f32 from vector<1x1x1xf32>
      %54 = vector.broadcast %53 : f32 to vector<1x128xf32>
      %c0_39 = arith.constant 0 : index
      %c0_40 = arith.constant 0 : index
      %55 = vector.load %arg7[%c0_39, %c0_40] : memref<8x128xf32, #tpu.memory_space<vmem>>, vector<8x128xf32>
      %56 = vector.shape_cast %55 : vector<8x128xf32> to vector<1x8x128xf32>
      %cst_41 = arith.constant dense<0.000000e+00> : vector<1xf32>
      %57 = vector.multi_reduction <add>, %56, %cst_41 [1, 2] : vector<1x8x128xf32> to vector<1xf32>
      %58 = vector.shape_cast %57 : vector<1xf32> to vector<1x1x1xf32>
      %59 = vector.extract %58[0, 0, 0] : f32 from vector<1x1x1xf32>
      %60 = vector.broadcast %59 : f32 to vector<1x128xf32>
      %c0_42 = arith.constant 0 : index
      %c0_43 = arith.constant 0 : index
      %61 = vector.load %arg8[%c0_42, %c0_43] : memref<8x128xf32, #tpu.memory_space<vmem>>, vector<8x128xf32>
      %62 = vector.shape_cast %61 : vector<8x128xf32> to vector<1x8x128xf32>
      %cst_44 = arith.constant dense<0.000000e+00> : vector<1xf32>
      %63 = vector.multi_reduction <add>, %62, %cst_44 [1, 2] : vector<1x8x128xf32> to vector<1xf32>
      %64 = vector.shape_cast %63 : vector<1xf32> to vector<1x1x1xf32>
      %65 = vector.extract %64[0, 0, 0] : f32 from vector<1x1x1xf32>
      %66 = vector.broadcast %65 : f32 to vector<1x128xf32>
      %c0_45 = arith.constant 0 : index
      %c0_46 = arith.constant 0 : index
      %67 = vector.load %arg9[%c0_45, %c0_46] : memref<8x128xf32, #tpu.memory_space<vmem>>, vector<8x128xf32>
      %68 = vector.shape_cast %67 : vector<8x128xf32> to vector<1x8x128xf32>
      %cst_47 = arith.constant dense<0.000000e+00> : vector<1xf32>
      %69 = vector.multi_reduction <add>, %68, %cst_47 [1, 2] : vector<1x8x128xf32> to vector<1xf32>
      %70 = vector.shape_cast %69 : vector<1xf32> to vector<1x1x1xf32>
      %71 = vector.extract %70[0, 0, 0] : f32 from vector<1x1x1xf32>
      %72 = vector.broadcast %71 : f32 to vector<1x128xf32>
      %c0_48 = arith.constant 0 : index
      %c0_49 = arith.constant 0 : index
      %73 = vector.load %arg10[%c0_48, %c0_49] : memref<8x128xf32, #tpu.memory_space<vmem>>, vector<8x128xf32>
      %74 = vector.shape_cast %73 : vector<8x128xf32> to vector<1x8x128xf32>
      %cst_50 = arith.constant dense<0.000000e+00> : vector<1xf32>
      %75 = vector.multi_reduction <add>, %74, %cst_50 [1, 2] : vector<1x8x128xf32> to vector<1xf32>
      %76 = vector.shape_cast %75 : vector<1xf32> to vector<1x1x1xf32>
      %77 = vector.extract %76[0, 0, 0] : f32 from vector<1x1x1xf32>
      %78 = vector.broadcast %77 : f32 to vector<1x128xf32>
      %cst_51 = arith.constant 0.000000e+00 : f32
      %79 = vector.broadcast %cst_51 : f32 to vector<3x128xf32>
      %80 = tpu.concatenate %54, %60, %66, %72, %78, %79 in 0 : vector<1x128xf32>, vector<1x128xf32>, vector<1x128xf32>, vector<1x128xf32>, vector<1x128xf32>, vector<3x128xf32> -> vector<8x128xf32>
      %c0_52 = arith.constant 0 : index
      %c0_53 = arith.constant 0 : index
      %c0_54 = arith.constant 0 : index
      %c0_55 = arith.constant 0 : index
      %81 = vector.load %arg5[%c0_52, %c0_53, %c0_54, %c0_55] : memref<1x1x8x128xf32, #tpu.memory_space<vmem>>, vector<1x1x8x128xf32>
      %82 = vector.shape_cast %81 : vector<1x1x8x128xf32> to vector<8x128xf32>
      %83 = vector.shape_cast %80 : vector<8x128xf32> to vector<1x1x8x128xf32>
      tpu.vector_store %arg5[%c0_52, %c0_53, %c0_54, %c0_55], %83 {strides = array<i32>} : memref<1x1x8x128xf32, #tpu.memory_space<vmem>>, vector<1x1x8x128xf32>,
    } else {
    }
    return
  }
  func.func @transform_0(%arg0: i32, %arg1: i32, %arg2: i32) -> (i32, i32, i32) {
    %c1_i32 = arith.constant 1 : i32
    %0 = arith.muli %arg1, %c1_i32 : i32
    %1 = arith.addi %0, %arg2 : i32
    %c0_i32 = arith.constant 0 : i32
    %c0_i32_0 = arith.constant 0 : i32
    return %arg0, %1, %c0_i32 : i32, i32, i32
  }
  func.func @transform_1(%arg0: i32, %arg1: i32, %arg2: i32) -> (i32, i32, i32) {
    %c1_i32 = arith.constant 1 : i32
    %0 = arith.muli %arg1, %c1_i32 : i32
    %1 = arith.addi %0, %arg2 : i32
    %c0_i32 = arith.constant 0 : i32
    %c0_i32_0 = arith.constant 0 : i32
    return %arg0, %1, %c0_i32 : i32, i32, i32
  }
  func.func @transform_2(%arg0: i32, %arg1: i32, %arg2: i32) -> (i32, i32, i32, i32) {
    %c0_i32 = arith.constant 0 : i32
    %c0_i32_0 = arith.constant 0 : i32
    %c0_i32_1 = arith.constant 0 : i32
    return %arg0, %arg1, %c0_i32, %c0_i32_0 : i32, i32, i32, i32
  }
}

</mosaic_0001>

<bundles_post_ra>
// kernel: tpu_custom_call.1
= control target key start
LH: loop header
LB: loop body
LE: loop exit
PB: predicated region body
PF: predicated region fallthrough
CT: control target
= control target key end

     0   :  { %7 = vsyncpa [#allocation8], 0  ;;  %s1178_s0 = inlined_call_operand.hbm [shape: f32[2,128,128], index: 0, kind: input, shape index: {}]   ;;  %s1179_s1 = inlined_call_operand.hbm [shape: f32[2,128,128], index: 1, kind: input, shape index: {}]   ;;  %s1180_s2 = inlined_call_operand.hbm [shape: f32[2,1,8,128], index: 2, kind: output, shape index: {}]  }
   0x1   :  { %9 = vsyncpa [#allocation8 + $0x1], 0 }
   0x2   :  { %10 = vsyncpa [#allocation11], 0 }
   0x3   :  { %12 = vsyncpa [#allocation11 + $0x1], 0 }
   0x4   :  { %13 = vsyncpa [#allocation9], 0 }
   0x5   :  { %15 = vsyncpa [#allocation9 + $0x1], 0  ;;  %s892_s9 = smov 0   ;;  %s894_s10 = smov 0  }
   0x6   :  { %s896_s11 = smov 0   ;;  %s898_s12 = smov 0  }
   0x7   :  { %s900_s13 = smov 0   ;;  %s902_s14 = smov 0  }
   0x8 LB: > { %s628_s15 = sadd.s32 4294967295, %s873_s14   ;;  %s629_s16 = sadd.s32 4294967294, %s873_s14   ;;  %s873_s14 = sphi %s902_s14, %s21_s14   ;;  %s869_s13 = sphi %s900_s13, %s1190_s13   ;;  %s865_s12 = sphi %s898_s12, %s1189_s12   ;;  %s861_s11 = sphi %s896_s11, %s1188_s11   ;;  %s857_s10 = sphi %s894_s10, %s1187_s10   ;;  %s853_s9 = sphi %s892_s9, %s1186_s9  }
   0x9   : > { %s40_s17 = sadd.s32 1, %s869_s13  ;;  %s51_s18 = sadd.s32 1, %s861_s11 }
   0xa   : > { %p42_p0 = scmp.ge.s32.totalorder %s40_s17, 2  ;;  %p58_p1 = scmp.ne.s32.totalorder %s861_s11, %s857_s10 }
   0xb   : > { %p59_p2 = scmp.eq.s32.totalorder %s873_s14, 0  ;;  %p64_p3 = scmp.ne.s32.totalorder %s857_s10, %s853_s9 }
   0xc   : > { %s1192_s17 = smov (%p42_p0, %s40_s17), 0  ;;  %p65_p5 = scmp.eq.s32.totalorder %s628_s15, 0 }
   0xd   : > { %p933_p4 = por %p59_p2, %p58_p1  ;;  %s46_s20 = ssub.s32 %s869_s13, %s1192_s17 }
   0xe   : > { %p120_p6 = scmp.eq.s32.totalorder %s628_s15, 1  ;;  %p49_p7 = scmp.eq.s32.totalorder %s46_s20, 0 }
   0xf   : > { %p939_p8 = por %p65_p5, %p64_p3  ;;  %p126_p10 = scmp.eq.s32.totalorder %s629_s16, 1 }
  0x10   : > { %p943_p9 = por %p120_p6, %p58_p1  ;;  %p631_p12 = scmp.ge.s32.totalorder %s873_s14, 2 }
  0x11   : > { %s948_s23 = scalar_select %p49_p7, %s861_s11, %s51_s18  }
  0x12   : > { %p950_p11 = por %p126_p10, %p64_p3  ;;  %p675_p13 = scmp.lt.s32.totalorder %s873_s14, 2 }
  0x13   : > { %s957_s25 = sand.u32 1, %s861_s11   ;;  %s646_s27 = sshll.u32 %s869_s13, 7 }
  0x14   : > { %s632_s26 = sshll.u32 %s957_s25, 7  ;;  %s158_s30 = scalar_lea.hbm %s1178_s0, %s646_s27 }
  0x15   : > { %s150_s3 = scalar_lea.vmem [#allocation7], %s632_s26  ;;  %s159_s5 = sshll.u32 %s158_s30, 4  ;;  %s160_s5 = int_to_ptr.hbm [resolvable:$true] %s159_s5 }
  0x16   : > { %s161_s4 = sshll.u32 %s150_s3, 4  ;;  %p966_p0 = pnand %p675_p13, %p933_p4  ;;  %s162_s4 = int_to_ptr.vmem [resolvable:$true] %s161_s4 }
  0x17   : > { %p638_p1 = scmp.ge.s32.totalorder %s873_s14, 1  ;;  %s147_s7 = scalar_lea.sflag [#allocation8], %s957_s25 }
  0x18   : > { %s875_s8 = smov 128   ;;  %s876_s15 = smov 8  }
  0x19   : > { %667 = dma.hbm_to_vmem [thread:$0]  (!%p966_p0), %s160_s5, 2048, %s162_s4, %s147_s7, %s875_s8, %s875_s8, %s876_s15  }
  0x1a   : > { %p194_p2 = scmp.lt.s32.totalorder %s873_s14, 3  ;;  %s183_s20 = scalar_lea.hbm %s1179_s1, %s646_s27 }
  0x1b   : > { %s184_s28 = sshll.u32 %s183_s20, 4  ;;  %s175_s19 = scalar_lea.vmem [#allocation10], %s632_s26  ;;  %s185_s28 = int_to_ptr.hbm [resolvable:$true] %s184_s28 }
  0x1c   : > { %p195_p3 = pnand %p638_p1, %p194_p2  ;;  %s186_s29 = sshll.u32 %s175_s19, 4  ;;  %s187_s29 = int_to_ptr.vmem [resolvable:$true] %s186_s29 }
  0x1d   : > { %s172_s30 = scalar_lea.sflag [#allocation11], %s957_s25  ;;  %s982_s3 = sand.u32 (!%p195_p3), 1, %s857_s10  }
  0x1e   : > { %670 = dma.hbm_to_vmem [thread:$0]  (!%p966_p0), %s185_s28, 2048, %s187_s29, %s172_s30, %s875_s8, %s875_s8, %s876_s15  }
  0x1f   : > { %198 = sbr.rel (%p195_p3) target bundleno = 267 (0x10b), region = 28  ;;  %s639_s4 = sshll.u32 (!%p195_p3), %s982_s3, 7 }
  0x20   : > { %s201_s5 = scalar_lea.sflag (!%p195_p3), [#allocation8], %s982_s3  ;;  %s986_s7 = scalar_lea.vmem (!%p195_p3), [#allocation7], %s639_s4 }
  0x24   : > { %840 = dma.done.wait (%p939_p8), %s201_s5, 2048  }
  0x25   : > { %842 = vsyncadd (%p939_p8), %s201_s5, 4294965248  ;;  %s211_s25 = scalar_lea.sflag [#allocation11], %s982_s3  ;;  %s993_s26 = scalar_lea.vmem [#allocation10], %s639_s4 }
  0x26   : > { %844 = dma.done.wait (%p939_p8), %s211_s25, 2048  }
  0x27   : > { %846 = vsyncadd (%p939_p8), %s211_s25, 4294965248  ;;  %v254_v0 = vld [vmem:[%s986_s7] sm:$0xff]  ;;  %v255_v1 = vld [vmem:[%s986_s7 + $0x8] sm:$0xff]  ;;  %s641_s21 = sshll.u32 %s982_s3, 3  ;;  %s643_s27 = sshll.u32 %s865_s12, 3  ;;  %vm487_vm0 = vcmask 1040384  }
  0x28   : > { %v256_v2 = vld [vmem:[%s986_s7 + $0x10] sm:$0xff]  ;;  %v334_v3 = vadd.f32 %v255_v1, %v254_v0  ;;  %v257_v4 = vld [vmem:[%s986_s7 + $0x18] sm:$0xff]  ;;  %v258_v6 = vld [vmem:[%s986_s7 + $0x20] sm:$0xff]  ;;  %v302_v28 = vmul.f32 %v254_v0, %v254_v0  ;;  %v303_v29 = vmul.f32 %v255_v1, %v255_v1  ;;  %s510_s16 = scalar_lea.hbm %s1180_s2, %s643_s27  ;;  %vm489_vm1 = vcmask 1041408   ;;  %s240_s28 = scalar_lea.vmem [#allocation12], %s641_s21 }
  0x29   : > { %v270_v8 = vld [vmem:[%s993_s26] sm:$0xff]  ;;  %v271_v9 = vld [vmem:[%s993_s26 + $0x8] sm:$0xff]  ;;  %v272_v11 = vld [vmem:[%s993_s26 + $0x10] sm:$0xff]  ;;  %v304_v44 = vmul.f32 %v256_v2, %v256_v2  ;;  %v305_v54 = vmul.f32 %v257_v4, %v257_v4  ;;  %v306_v63 = vmul.f32 %v258_v6, %v258_v6  ;;  %vm491_vm2 = vcmask 1042432   ;;  %s512_s19 = sshll.u32 %s240_s28, 4  ;;  %s514_s12 = sshll.u32 %s510_s16, 4  ;;  %s513_s19 = int_to_ptr.vmem [resolvable:$true] %s512_s19  ;;  %s515_s12 = int_to_ptr.hbm [resolvable:$true] %s514_s12 }
  0x2a   : > { %v335_v5 = vadd.f32 %v334_v3, %v256_v2  ;;  %v1007_v10 = vld [vmem:[%s986_s7 + $0x28] sm:$0xff]  ;;  %v273_v12 = vld [vmem:[%s993_s26 + $0x18] sm:$0xff]  ;;  %v286_v13 = vmul.f32 %v270_v8, %v254_v0  ;;  %v287_v14 = vmul.f32 %v271_v9, %v255_v1  ;;  %v1012_v16 = vld [vmem:[%s993_s26 + $0x20] sm:$0xff]  ;;  %v288_v17 = vmul.f32 %v272_v11, %v256_v2  ;;  %s499_s4 = scalar_lea.sflag [#allocation9], %s982_s3  ;;  %s801_s5 = sshra.s32 %s515_s12, 4  ;;  %s802_s5 = int_to_ptr.hbm [resolvable:$true] %s801_s5 }
  0x2b   : > { %v1015_v18 = vld [vmem:[%s986_s7 + $0x30] sm:$0xff]  ;;  %v289_v19 = vmul.f32 %v273_v12, %v257_v4  ;;  %v1019_v22 = vld [vmem:[%s993_s26 + $0x28] sm:$0xff]  ;;  %v1022_v23 = vld [vmem:[%s986_s7 + $0x38] sm:$0xff]  ;;  %v290_v24 = vmul.f32 %v1012_v16, %v258_v6  ;;  %v318_v34 = vmul.f32 %v270_v8, %v270_v8  ;;  %v319_v35 = vmul.f32 %v271_v9, %v271_v9  ;;  %s807_s21 = scalar_lea.hbm %s1180_s2, 16  ;;  %p808_p7 = scmp.lt.s32.totalorder %s802_s5, %s1180_s2 }
  0x2c   : > { %v336_v7 = vadd.f32 %v335_v5, %v257_v4  ;;  %v366_v20 = vadd.f32 %v287_v14, %v286_v13  ;;  %v1027_v27 = vld [vmem:[%s993_s26 + $0x30] sm:$0xff]  ;;  %v1030_v30 = vld [vmem:[%s986_s7 + $0x40] sm:$0xff]  ;;  %v1033_v31 = vld [vmem:[%s993_s26 + $0x38] sm:$0xff]  ;;  %v291_v32 = vmul.f32 %v1019_v22, %v1007_v10  ;;  %v320_v41 = vmul.f32 %v272_v11, %v272_v11 }
  0x2d   : > { %v1039_v37 = vld [vmem:[%s986_s7 + $0x48] sm:$0xff]  ;;  %v1042_v38 = vld [vmem:[%s993_s26 + $0x40] sm:$0xff]  ;;  %v292_v39 = vmul.f32 %v1027_v27, %v1015_v18  ;;  %v293_v43 = vmul.f32 %v1033_v31, %v1022_v23  ;;  %v382_v45 = vadd.f32 %v303_v29, %v302_v28  ;;  %v1050_v46 = vld [vmem:[%s986_s7 + $0x50] sm:$0xff]  ;;  %v321_v49 = vmul.f32 %v273_v12, %v273_v12 }
  0x2e   : > { %v337_v15 = vadd.f32 %v336_v7, %v258_v6  ;;  %v367_v25 = vadd.f32 %v366_v20, %v288_v17  ;;  %v1053_v47 = vld [vmem:[%s993_s26 + $0x48] sm:$0xff]  ;;  %v398_v50 = vadd.f32 %v319_v35, %v318_v34  ;;  %v350_v51 = vadd.f32 %v271_v9, %v270_v8  ;;  %v1059_v55 = vld [vmem:[%s986_s7 + $0x58] sm:$0xff]  ;;  %v1062_v56 = vld [vmem:[%s993_s26 + $0x50] sm:$0xff] }
  0x2f   : > { %v294_v53 = vmul.f32 %v1042_v38, %v1030_v30  ;;  %v322_v58 = vmul.f32 %v1012_v16, %v1012_v16  ;;  %v295_v62 = vmul.f32 %v1053_v47, %v1039_v37  ;;  %v383_v0 = vadd.f32 %v382_v45, %v304_v44  ;;  %v1070_v1 = vld [vmem:[%s986_s7 + $0x60] sm:$0xff]  ;;  %v1073_v2 = vld [vmem:[%s993_s26 + $0x58] sm:$0xff]  ;;  %v1083_v13 = vld [vmem:[%s986_s7 + $0x68] sm:$0xff] }
  0x30   : > { %v338_v21 = vadd.f32 %v337_v15, %v1007_v10  ;;  %v368_v33 = vadd.f32 %v367_v25, %v289_v19  ;;  %v399_v59 = vadd.f32 %v398_v50, %v320_v41  ;;  %v351_v60 = vadd.f32 %v350_v51, %v272_v11  ;;  %v1086_v14 = vld [vmem:[%s993_s26 + $0x60] sm:$0xff]  ;;  %v268_v25 = vld [vmem:[%s986_s7 + $0x70] sm:$0xff] }
  0x31   : > { %v323_v4 = vmul.f32 %v1019_v22, %v1019_v22  ;;  %v296_v9 = vmul.f32 %v1062_v56, %v1050_v46  ;;  %v307_v6 = vmul.f32 %v1007_v10, %v1007_v10  ;;  %v384_v11 = vadd.f32 %v383_v0, %v305_v54 }
  0x32   : > { %v339_v26 = vadd.f32 %v338_v21, %v1015_v18  ;;  %v369_v40 = vadd.f32 %v368_v33, %v290_v24  ;;  %v400_v5 = vadd.f32 %v399_v59, %v321_v49  ;;  %v352_v7 = vadd.f32 %v351_v60, %v273_v12  ;;  %v285_v49 = vld [vmem:[%s993_s26 + $0x78] sm:$0xff] }
  0x33   : > { %v324_v17 = vmul.f32 %v1027_v27, %v1027_v27  ;;  %v297_v21 = vmul.f32 %v1073_v2, %v1059_v55  ;;  %v308_v10 = vmul.f32 %v1015_v18, %v1015_v18  ;;  %v385_v24 = vadd.f32 %v384_v11, %v306_v63 }
  0x34   : > { %v340_v36 = vadd.f32 %v339_v26, %v1022_v23  ;;  %v370_v48 = vadd.f32 %v369_v40, %v291_v32  ;;  %v401_v19 = vadd.f32 %v400_v5, %v322_v58  ;;  %v353_v12 = vadd.f32 %v352_v7, %v1012_v16  ;;  %v283_v26 = vld [vmem:[%s993_s26 + $0x68] sm:$0xff] }
  0x35   : > { %v325_v29 = vmul.f32 %v1033_v31, %v1033_v31  ;;  %v298_v34 = vmul.f32 %v1086_v14, %v1070_v1  ;;  %v309_v35 = vmul.f32 %v1022_v23, %v1022_v23  ;;  %v386_v18 = vadd.f32 %v385_v24, %v307_v6 }
  0x36   : > { %v341_v42 = vadd.f32 %v340_v36, %v1030_v30  ;;  %v371_v57 = vadd.f32 %v370_v48, %v292_v39  ;;  %v402_v32 = vadd.f32 %v401_v19, %v323_v4  ;;  %v354_v16 = vadd.f32 %v353_v12, %v1019_v22  ;;  %v269_v36 = vld [vmem:[%s986_s7 + $0x78] sm:$0xff]  ;;  %v284_v39 = vld [vmem:[%s993_s26 + $0x70] sm:$0xff]  ;;  %s803_s7 = scalar_lea.hbm %s802_s5, 8 }
  0x37   : > { %v326_v41 = vmul.f32 %v1042_v38, %v1042_v38  ;;  %v299_v22 = vmul.f32 %v283_v26, %v1083_v13  ;;  %v310_v45 = vmul.f32 %v1030_v30, %v1030_v30  ;;  %v387_v48 = vadd.f32 %v386_v18, %v308_v10  ;;  %p804_p4 = scmp.ne.s32.totalorder %s802_s5, %s803_s7  ;;  %p809_p8 = scmp.lt.s32.totalorder %s807_s21, %s803_s7 }
  0x38   : > { %v342_v52 = vadd.f32 %v341_v42, %v1039_v37  ;;  %v372_v3 = vadd.f32 %v371_v57, %v293_v43  ;;  %v403_v42 = vadd.f32 %v402_v32, %v324_v17  ;;  %v355_v43 = vadd.f32 %v354_v16, %v1027_v27 }
  0x39   : > { %v327_v23 = vmul.f32 %v1053_v47, %v1053_v47  ;;  %v300_v54 = vmul.f32 %v284_v39, %v268_v25  ;;  %v311_v27 = vmul.f32 %v1039_v37, %v1039_v37  ;;  %v388_v57 = vadd.f32 %v387_v48, %v309_v35  ;;  %p805_p5 = pnand %p804_p4, %p943_p9  ;;  %p810_p10 = por %p809_p8, %p808_p7 }
  0x3a   : > { %v343_v61 = vadd.f32 %v342_v52, %v1050_v46  ;;  %v373_v15 = vadd.f32 %v372_v3, %v294_v53  ;;  %v404_v51 = vadd.f32 %v403_v42, %v325_v29  ;;  %v356_v52 = vadd.f32 %v355_v43, %v1033_v31 }
  0x3b   : > { %v328_v59 = vmul.f32 %v1062_v56, %v1062_v56  ;;  %v389_v63 = vadd.f32 %v388_v57, %v310_v45  ;;  %v329_v0 = vmul.f32 %v1073_v2, %v1073_v2  ;;  %v313_v4 = vmul.f32 %v1059_v55, %v1059_v55  ;;  %p806_p6 = pneg %p805_p5 }
  0x3c   : > { %v344_v8 = vadd.f32 %v343_v61, %v1059_v55  ;;  %v374_v28 = vadd.f32 %v373_v15, %v295_v62  ;;  %v405_v30 = vadd.f32 %v404_v51, %v326_v41  ;;  %v357_v60 = vadd.f32 %v356_v52, %v1042_v38 }
  0x3d   : > { %v301_v61 = vmul.f32 %v285_v49, %v269_v36  ;;  %v312_v62 = vmul.f32 %v1050_v46, %v1050_v46  ;;  %v390_v5 = vadd.f32 %v389_v63, %v311_v27  ;;  %v330_v38 = vmul.f32 %v1086_v14, %v1086_v14  ;;  %p811_p13 = pnand %p810_p10, %p806_p6 }
  0x3e   : > { %v345_v20 = vadd.f32 %v344_v8, %v1070_v1  ;;  %v375_v40 = vadd.f32 %v374_v28, %v296_v9  ;;  %v406_v3 = vadd.f32 %v405_v30, %v327_v23  ;;  %v358_v37 = vadd.f32 %v357_v60, %v1053_v47 }
  0x3f   : > { %v314_v46 = vmul.f32 %v1070_v1, %v1070_v1  ;;  %v391_v6 = vadd.f32 %v390_v5, %v312_v62  ;;  %v331_v15 = vmul.f32 %v283_v26, %v283_v26  ;;  %v315_v55 = vmul.f32 %v1083_v13, %v1083_v13 }
  0x40   : > { %v346_v33 = vadd.f32 %v345_v20, %v1083_v13  ;;  %v376_v50 = vadd.f32 %v375_v40, %v297_v21  ;;  %v407_v8 = vadd.f32 %v406_v3, %v328_v59  ;;  %v359_v9 = vadd.f32 %v358_v37, %v1062_v56 }
  0x41   : > { %v392_v19 = vadd.f32 %v391_v6, %v313_v4  ;;  %v332_v12 = vmul.f32 %v284_v39, %v284_v39  ;;  %v316_v10 = vmul.f32 %v268_v25, %v268_v25  ;;  %v333_v24 = vmul.f32 %v285_v49, %v285_v49 }
  0x42   : > { %v347_v44 = vadd.f32 %v346_v33, %v268_v25  ;;  %v377_v58 = vadd.f32 %v376_v50, %v298_v34  ;;  %v408_v17 = vadd.f32 %v407_v8, %v329_v0  ;;  %v360_v47 = vadd.f32 %v359_v9, %v1073_v2 }
  0x43   : > { %v393_v56 = vadd.f32 %v392_v19, %v314_v46  ;;  %v317_v29 = vmul.f32 %v269_v36, %v269_v36  ;;  %vm493_vm3 = vcmask 1043456   ;;  %vm495_vm4 = vcmask 1044480  }
  0x44   : > { %v348_v53 = vadd.f32 %v347_v44, %v269_v36  ;;  %v378_v31 = vadd.f32 %v377_v58, %v299_v22  ;;  %v409_v20 = vadd.f32 %v408_v17, %v330_v38  ;;  %v361_v21 = vadd.f32 %v360_v47, %v1086_v14 }
  0x45   : > { %v394_v32 = vadd.f32 %v393_v56, %v315_v55 }
  0x46   : > { %433 = vadd.xlane.f32.xlu0 %v348_v53  ;;  %v379_v7 = vadd.f32 %v378_v31, %v300_v54  ;;  %v410_v28 = vadd.f32 %v409_v20, %v331_v15  ;;  %v362_v1 = vadd.f32 %v361_v21, %v283_v26 }
  0x47   : > { %v395_v34 = vadd.f32 %v394_v32, %v316_v10 }
  0x48   : > { %v380_v11 = vadd.f32 %v379_v7, %v301_v61  ;;  %v411_v16 = vadd.f32 %v410_v28, %v332_v12  ;;  %v363_v33 = vadd.f32 %v362_v1, %v284_v39 }
  0x49   : > { %v396_v18 = vadd.f32 %v395_v34, %v317_v29 }
  0x4a   : > { %455 = vadd.xlane.f32.xlu1 %v380_v11  ;;  %v412_v2 = vadd.f32 %v411_v16, %v333_v24  ;;  %v364_v35 = vadd.f32 %v363_v33, %v285_v49 }
  0x4c   : > { %477 = vadd.xlane.f32.xlu2 %v412_v2 }
  0x4e   : > { %444 = vadd.xlane.f32.xlu0 %v364_v35 }
  0x52   : > { %466 = vadd.xlane.f32.xlu1 %v396_v18 }
  0xb9   : > { %v434_v13 = vpop.xlane.xlu0 %433 }
  0xba   : > { %v435_v40 = vrot.slane %v434_v13, 4 }
  0xbc   : > { %v436_v41 = vadd.f32 %v435_v40, %v434_v13 }
  0xbd   : > { %v456_v25 = vpop.xlane.xlu1 %455 }
  0xbe   : > { %v437_v14 = vrot.slane %v436_v41, 2  ;;  %v457_v43 = vrot.slane %v456_v25, 4 }
  0xbf   : > { %v478_v39 = vpop.xlane.xlu2 %477 }
  0xc0   : > { %v438_v42 = vadd.f32 %v437_v14, %v436_v41  ;;  %v458_v26 = vadd.f32 %v457_v43, %v456_v25  ;;  %v479_v48 = vrot.slane %v478_v39, 4 }
  0xc1   : > { %v445_v45 = vpop.xlane.xlu0 %444 }
  0xc2   : > { %v439_v44 = vrot.slane %v438_v42, 1  ;;  %v459_v22 = vrot.slane %v458_v26, 2  ;;  %v446_v49 = vrot.slane %v445_v45, 4  ;;  %v480_v51 = vadd.f32 %v479_v48, %v478_v39 }
  0xc4   : > { %v440_v36 = vadd.f32 %v439_v44, %v438_v42  ;;  %v447_v52 = vadd.f32 %v446_v49, %v445_v45  ;;  %v460_v54 = vadd.f32 %v459_v22, %v458_v26  ;;  %v481_v27 = vrot.slane %v480_v51, 2 }
  0xc5   : > { %v467_v50 = vpop.xlane.xlu1 %466 }
  0xc6   : > { %648 = vpush %v440_v36  ;;  %v468_v23 = vrot.slane %v467_v50, 4  ;;  %v448_v57 = vrot.slane %v447_v52, 2  ;;  %v482_v59 = vadd.f32 %v481_v27, %v480_v51  ;;  %v461_v61 = vrot.slane %v460_v54, 1 }
  0xc8   : > { %v469_v53 = vadd.f32 %v468_v23, %v467_v50  ;;  %v449_v30 = vadd.f32 %v448_v57, %v447_v52  ;;  %v483_v31 = vrot.slane %v482_v59, 1  ;;  %v462_v3 = vadd.f32 %v461_v61, %v460_v54 }
  0xca   : > { %v470_v58 = vrot.slane %v469_v53, 2  ;;  %v450_v62 = vrot.slane %v449_v30, 1  ;;  %v484_v4 = vadd.f32 %v483_v31, %v482_v59 }
  0xcc   : > { %v471_v60 = vadd.f32 %v470_v58, %v469_v53  ;;  %v451_v0 = vadd.f32 %v450_v62, %v449_v30 }
  0xce   : > { %v472_v63 = vrot.slane %v471_v60, 1  ;;  %650 = vpush %v451_v0 }
  0xcf   : > { %652 = vpush %v462_v3 }
  0xd0   : > { %v473_v37 = vadd.f32 %v472_v63, %v471_v60 }
  0xd2   : > { %654 = vpush %v473_v37 }
  0xd3   : > { %656 = vpush %v484_v4 }
  0xf7   : > { %s649_s6 = spop %648 }
  0xf8   : > { %v442_v5 = vstv %s649_s6 }
  0xff   : > { %s651_s18 = spop %650 }
 0x100   : > { %v453_v7 = vstv %s651_s18  ;;  %s653_s20 = spop %652 }
 0x101   : > { %v488_v38 = vsel %vm487_vm0, %v442_v5, %v453_v7  ;;  %v464_v8 = vstv %s653_s20 }
 0x102   : > { %v490_v9 = vsel %vm489_vm1, %v488_v38, %v464_v8 }
 0x103   : > { %s655_s29 = spop %654 }
 0x104   : > { %v475_v46 = vstv %s655_s29  ;;  %s657_s30 = spop %656 }
 0x105   : > { %v492_v6 = vsel %vm491_vm2, %v490_v9, %v475_v46  ;;  %v486_v11 = vstv %s657_s30 }
 0x106   : > { %v494_v15 = vsel %vm493_vm3, %v492_v6, %v486_v11 }
 0x107   : > { %v496_v17 = vsel %vm495_vm4, %v494_v15, 0.0 }
 0x108   : > { %497 = vst [vmem:[%s240_s28] sm:$0xff] %v496_v17 }
 0x109   : > { %814 = shalt.err (!%p811_p13)
}
 0x10a   : > { %662 = dma.vmem_to_hbm [thread:$0]  (%p943_p9), %s513_s19, 128, %s515_s12, %s499_s4  }
 0x10b PF: > { %s526_s3 = sand.u32 1, %s853_s9   ;;  %p672_p0 = pnand %p631_p12, %p950_p11 }
 0x10c   : > { %s527_s8 = scalar_lea.sflag [#allocation9], %s526_s3 }
 0x10d   : > { %p673_p1 = pneg %p672_p0 }
 0x10f   : > { %848 = dma.done.wait (%p673_p1), %s527_s8, 128  }
 0x110   : > { %850 = vsyncadd (%p673_p1), %s527_s8, 4294967168  ;;  %s21_s14 = sadd.s32 1, %s873_s14   ;;  %s1186_s9 = smov %s857_s10 }
 0x111   : > { %p18_p2 = scmp.ge.s32.totalorder %s21_s14, 4   ;;  %s1187_s10 = smov %s861_s11 }
 0x112   : > { %s1188_s11 = smov %s948_s23  ;;  %s1189_s12 = smov %s869_s13 }
 0x113   : > { %s1190_s13 = smov %s1192_s17  ;;  %20 = sbr.rel (!%p18_p2) target bundleno = 8 (0x8), region = 94 }
 0x118   :  { %533 = vsyncpa [#allocation8], 1 }
 0x119   :  { %535 = vsyncpa [#allocation8 + $0x1], 1 }
 0x11a   :  { %536 = vsyncpa [#allocation11], 1 }
 0x11b   :  { %538 = vsyncpa [#allocation11 + $0x1], 1 }
 0x11c   :  { %539 = vsyncpa [#allocation9], 1 }
 0x11d   :  { %541 = vsyncpa [#allocation9 + $0x1], 1 }

</bundles_post_ra>
